<compile_context>
chip_gen: v6e
topology: v6e:2x2x1
jax: 0.10.0
libtpu: 0.0.40
codegen_flags: <defaults>
</compile_context>

<pallas_src>
import math

import jax
import jax.numpy as jnp
from jax.experimental import pallas as pl
from jax.experimental.pallas import tpu as pltpu


def _round_up(x, m):
    return ((x + m - 1) // m) * m


def class_block_kernel(x_ref, w1_ref, b1_ref, w2_ref, b2_ref, out_ref):
    # First Linear with BN already folded in: (TILE_B, D_in) @ (D_in, D_bn) + (1, D_bn)
    h = jnp.dot(x_ref[...], w1_ref[...], preferred_element_type=jnp.float32)
    h = h + b1_ref[...]

    # relu=False -> no LeakyReLU; Dropout -> identity in eval mode.

    # Classifier Linear: (TILE_B, D_bn) @ (D_bn, C_pad) + (1, C_pad)
    out = jnp.dot(h.astype(w2_ref.dtype), w2_ref[...],
                  preferred_element_type=jnp.float32)
    out_ref[...] = (out + b2_ref[...]).astype(out_ref.dtype)


def class_block_forward(x, params, *, tile_b=256):
    """x: (B, input_dim) float32 -> (B, class_num) float32 (eval-mode forward)."""
    w1, b1, gamma, beta, running_mean, running_var, w2, b2 = params
    B, D_in = x.shape
    D_bn = w1.shape[1]
    C = w2.shape[1]
    eps = 1e-5

    # ---- Fold eval-mode BatchNorm into the first Linear (exact affine fold). ----
    scale = gamma * jax.lax.rsqrt(running_var + eps)          # (1, D_bn)
    w1_f = w1 * scale                                         # per-output-column scale
    b1_f = (b1 - running_mean) * scale + beta                 # (1, D_bn)

    # ---- Lane-dense output: pad class_num up to a multiple of 128. ----
    C_pad = _round_up(C, 128)
    if C_pad != C:
        w2 = jnp.pad(w2, ((0, 0), (0, C_pad - C)))
        b2 = jnp.pad(b2, ((0, 0), (0, C_pad - C)))

    # ---- Batch tiling: multiple of 8 sublanes, pad B to a whole number of tiles. ----
    tile_b = max(8, min(tile_b, _round_up(B, 8)))
    B_pad = _round_up(B, tile_b)
    if B_pad != B:
        x = jnp.pad(x, ((0, B_pad - B), (0, 0)))
    grid = (B_pad // tile_b,)

    def resident(shape):
        # Weights / biases: same block every grid step -> DMA'd once, stay in VMEM.
        return pl.BlockSpec(shape, lambda i: tuple(0 for _ in shape))

    # Cost hint for XLA scheduling around the custom call.
    flops = 2 * B_pad * (D_in * D_bn + D_bn * C_pad)
    bytes_accessed = 4 * (B_pad * D_in + D_in * D_bn + D_bn
                          + D_bn * C_pad + C_pad + B_pad * C_pad)

    # Generation-aware VMEM ceiling with headroom (v7x physical is only 64 MiB):
    # double-buffered x/out tiles + resident weights + h intermediate.
    vmem_needed = 4 * (2 * tile_b * D_in + 2 * tile_b * C_pad
                       + D_in * D_bn + D_bn + D_bn * C_pad + C_pad
                       + tile_b * D_bn)
    vmem_limit = min(max(int(vmem_needed * 2), 16 * 1024 * 1024), 48 * 1024 * 1024)

    out = pl.pallas_call(
        class_block_kernel,
        out_shape=jax.ShapeDtypeStruct((B_pad, C_pad), jnp.float32),
        grid=grid,
        in_specs=[
            pl.BlockSpec((tile_b, D_in), lambda i: (i, 0)),   # x: batch-tiled
            resident(w1_f.shape),
            resident(b1_f.shape),
            resident(w2.shape),
            resident(b2.shape),
        ],
        out_specs=pl.BlockSpec((tile_b, C_pad), lambda i: (i, 0)),
        compiler_params=pltpu.CompilerParams(
            dimension_semantics=("parallel",),
            vmem_limit_bytes=vmem_limit,
        ),
        cost_estimate=pl.CostEstimate(
            flops=flops, transcendentals=0, bytes_accessed=bytes_accessed),
    )(x, w1_f, b1_f, w2, b2)

    return out[:B, :C]


def init_class_block_params(key, input_dim, class_num, num_bottleneck):
    """Deterministic init mirroring weights_init_kaiming / weights_init_classifier."""
    k1, k2, k3 = jax.random.split(key, 3)

    # Linear(input_dim, num_bottleneck): kaiming_normal_ fan_out, a=0
    #   std = sqrt(2 / fan_out), fan_out = num_bottleneck. Stored transposed (in, out).
    std1 = math.sqrt(2.0 / num_bottleneck)
    w1 = jax.random.normal(k1, (input_dim, num_bottleneck), jnp.float32) * std1
    b1 = jnp.zeros((1, num_bottleneck), jnp.float32)

    # BatchNorm1d: weight ~ N(1.0, 0.02), bias = 0; running stats at defaults.
    gamma = 1.0 + 0.02 * jax.random.normal(k2, (1, num_bottleneck), jnp.float32)
    beta = jnp.zeros((1, num_bottleneck), jnp.float32)
    running_mean = jnp.zeros((1, num_bottleneck), jnp.float32)
    running_var = jnp.ones((1, num_bottleneck), jnp.float32)

    # classifier Linear(num_bottleneck, class_num): N(0, 0.001), bias = 0.
    w2 = jax.random.normal(k3, (num_bottleneck, class_num), jnp.float32) * 0.001
    b2 = jnp.zeros((1, class_num), jnp.float32)

    return (w1, b1, gamma, beta, running_mean, running_var, w2, b2)


def class_block_reference(x, params):
    """Pure-JAX reference (unfused BN) for correctness checking."""
    w1, b1, gamma, beta, running_mean, running_var, w2, b2 = params
    h = x @ w1 + b1
    h = (h - running_mean) / jnp.sqrt(running_var + 1e-5) * gamma + beta
    return h @ w2 + b2


if __name__ == "__main__":
    # Small shapes consistent with the module's forward: x is (batch, input_dim).
    B, INPUT_DIM, NUM_BOTTLENECK, CLASS_NUM = 8, 64, 128, 32

    key = jax.random.PRNGKey(0)
    kx, kp = jax.random.split(key)

    x = jax.random.normal(kx, (B, INPUT_DIM), jnp.float32)
    params = init_class_block_params(kp, INPUT_DIM, CLASS_NUM, NUM_BOTTLENECK)

    out = class_block_forward(x, params)
    out = jax.block_until_ready(out)

    ref = class_block_reference(x, params)
    assert out.shape == (B, CLASS_NUM), out.shape
    assert jnp.allclose(out, ref, atol=1e-4, rtol=1e-4), "mismatch vs reference"

    print("KERNEL_OK")
</pallas_src>

<mosaic_0001>
module attributes {stable_mosaic.version = 11 : i64} {
  func.func @class_block_kernel(%arg0: i32, %arg1: memref<8x64xf32, #tpu.memory_space<vmem>>, %arg2: memref<64x128xf32, #tpu.memory_space<vmem>>, %arg3: memref<1x128xf32, #tpu.memory_space<vmem>>, %arg4: memref<128x128xf32, #tpu.memory_space<vmem>>, %arg5: memref<1x128xf32, #tpu.memory_space<vmem>>, %arg6: memref<8x128xf32, #tpu.memory_space<vmem>>) attributes {dimension_semantics = [#tpu.dimension_semantics<parallel>], iteration_bounds = array<i64: 1>, scalar_prefetch = 0 : i64, scratch_operands = 0 : i64, tpu.core_type = #tpu.core_type<tc>, window_params = [{transform_indices = @transform_0, window_bounds = array<i64: 8, 64>}, {pipeline_mode = #tpu.pipeline_mode<synchronous>, transform_indices = @transform_1, window_bounds = array<i64: 64, 128>}, {pipeline_mode = #tpu.pipeline_mode<synchronous>, transform_indices = @transform_2, window_bounds = array<i64: 1, 128>}, {pipeline_mode = #tpu.pipeline_mode<synchronous>, transform_indices = @transform_3, window_bounds = array<i64: 128, 128>}, {pipeline_mode = #tpu.pipeline_mode<synchronous>, transform_indices = @transform_4, window_bounds = array<i64: 1, 128>}, {transform_indices = @transform_5, window_bounds = array<i64: 8, 128>}]} {
    %c0 = arith.constant 0 : index
    %c0_0 = arith.constant 0 : index
    %0 = vector.load %arg1[%c0, %c0_0] : memref<8x64xf32, #tpu.memory_space<vmem>>, vector<8x64xf32>
    %c0_1 = arith.constant 0 : index
    %c0_2 = arith.constant 0 : index
    %1 = vector.load %arg2[%c0_1, %c0_2] : memref<64x128xf32, #tpu.memory_space<vmem>>, vector<64x128xf32>
    %cst = arith.constant dense<0.000000e+00> : vector<8x128xf32>
    %2 = tpu.matmul %0, %1, %cst {dimension_numbers = #tpu.dot_dimension_numbers<[1], [0], [0], [1], [0, 0, 1, 1], [], []>} : vector<8x64xf32>, vector<64x128xf32>, vector<8x128xf32> -> vector<8x128xf32>
    %c0_3 = arith.constant 0 : index
    %c0_4 = arith.constant 0 : index
    %3 = vector.load %arg3[%c0_3, %c0_4] : memref<1x128xf32, #tpu.memory_space<vmem>>, vector<1x128xf32>
    %4 = vector.broadcast %3 : vector<1x128xf32> to vector<8x128xf32>
    %5 = arith.addf %2, %4 : vector<8x128xf32>
    %c0_5 = arith.constant 0 : index
    %c0_6 = arith.constant 0 : index
    %6 = vector.load %arg4[%c0_5, %c0_6] : memref<128x128xf32, #tpu.memory_space<vmem>>, vector<128x128xf32>
    %cst_7 = arith.constant dense<0.000000e+00> : vector<8x128xf32>
    %7 = tpu.matmul %5, %6, %cst_7 {dimension_numbers = #tpu.dot_dimension_numbers<[1], [0], [0], [1], [0, 0, 1, 1], [], []>} : vector<8x128xf32>, vector<128x128xf32>, vector<8x128xf32> -> vector<8x128xf32>
    %c0_8 = arith.constant 0 : index
    %c0_9 = arith.constant 0 : index
    %8 = vector.load %arg5[%c0_8, %c0_9] : memref<1x128xf32, #tpu.memory_space<vmem>>, vector<1x128xf32>
    %9 = vector.broadcast %8 : vector<1x128xf32> to vector<8x128xf32>
    %10 = arith.addf %7, %9 : vector<8x128xf32>
    %c0_10 = arith.constant 0 : index
    %c0_11 = arith.constant 0 : index
    %11 = vector.load %arg6[%c0_10, %c0_11] : memref<8x128xf32, #tpu.memory_space<vmem>>, vector<8x128xf32>
    tpu.vector_store %arg6[%c0_10, %c0_11], %10 {strides = array<i32>} : memref<8x128xf32, #tpu.memory_space<vmem>>, vector<8x128xf32>,
    return
  }
  func.func @transform_0(%arg0: i32) -> (i32, i32) {
    %c0_i32 = arith.constant 0 : i32
    %c0_i32_0 = arith.constant 0 : i32
    return %arg0, %c0_i32 : i32, i32
  }
  func.func @transform_1(%arg0: i32) -> (i32, i32) {
    %c0_i32 = arith.constant 0 : i32
    %c0_i32_0 = arith.constant 0 : i32
    %c0_i32_1 = arith.constant 0 : i32
    return %c0_i32, %c0_i32_0 : i32, i32
  }
  func.func @transform_2(%arg0: i32) -> (i32, i32) {
    %c0_i32 = arith.constant 0 : i32
    %c0_i32_0 = arith.constant 0 : i32
    %c0_i32_1 = arith.constant 0 : i32
    return %c0_i32, %c0_i32_0 : i32, i32
  }
  func.func @transform_3(%arg0: i32) -> (i32, i32) {
    %c0_i32 = arith.constant 0 : i32
    %c0_i32_0 = arith.constant 0 : i32
    %c0_i32_1 = arith.constant 0 : i32
    return %c0_i32, %c0_i32_0 : i32, i32
  }
  func.func @transform_4(%arg0: i32) -> (i32, i32) {
    %c0_i32 = arith.constant 0 : i32
    %c0_i32_0 = arith.constant 0 : i32
    %c0_i32_1 = arith.constant 0 : i32
    return %c0_i32, %c0_i32_0 : i32, i32
  }
  func.func @transform_5(%arg0: i32) -> (i32, i32) {
    %c0_i32 = arith.constant 0 : i32
    %c0_i32_0 = arith.constant 0 : i32
    return %arg0, %c0_i32 : i32, i32
  }
}

</mosaic_0001>

<bundles_post_ra>
// kernel: tpu_custom_call.1
= control target key start
LH: loop header
LB: loop body
LE: loop exit
PB: predicated region body
PF: predicated region fallthrough
CT: control target
= control target key end

     0   :  { %10 = vsyncpa [#allocation3], 0  ;;  %s519_s0 = inlined_call_operand.hbm [shape: f32[8,64], index: 0, kind: input, shape index: {}]   ;;  %s520_s1 = inlined_call_operand.hbm [shape: f32[64,128], index: 1, kind: input, shape index: {}]   ;;  %s521_s2 = inlined_call_operand.vmem [shape: f32[1,128], index: 2, kind: input, shape index: {}]   ;;  %s522_s3 = inlined_call_operand.hbm [shape: f32[128,128], index: 3, kind: input, shape index: {}]   ;;  %s523_s4 = inlined_call_operand.vmem [shape: f32[1,128], index: 4, kind: input, shape index: {}]   ;;  %s524_s5 = inlined_call_operand.hbm [shape: f32[8,128], index: 5, kind: output, shape index: {}]  }
   0x1   :  { %11 = vsyncpa [#allocation6], 0 }
   0x2   :  { %12 = vsyncpa [#allocation4], 0  ;;  %s437_s18 = smov [#allocation5]  }
   0x3   :  { %s28_s19 = sshll.u32 %s437_s18, 4  ;;  %s29_s19 = int_to_ptr.vmem [resolvable:$true] %s28_s19 }
   0x4   :  { %s359_s20 = scalar_lea.vmem %s29_s19, 1024  ;;  %p364_p1 = scmp.lt.s32.totalorder %s29_s19, %s29_s19 }
   0x5   :  { %p360_p0 = scmp.ne.s32.totalorder %s29_s19, %s359_s20  ;;  %p365_p2 = scmp.lt.s32.totalorder %s359_s20, %s359_s20 }
   0x7   :  { %p366_p3 = por %p365_p2, %p364_p1 }
   0x9   :  { %p367_p4 = pnand %p366_p3, %p360_p0 }
   0xb   :  { %370 = shalt.err (!%p367_p4)
}
   0xc   :  { %s438_s21 = smov 128   ;;  %s439_s22 = smov 8  }
   0xd   :  { %34 = dma.hbm_to_vmem [thread:$0]  %s520_s1, 1024, %s29_s19, [#allocation6], %s438_s21, %s438_s21, %s439_s22  }
   0xe   :  { %s440_s25 = smov [#allocation2]   ;;  %s441_s27 = smov [#allocation7]  }
   0xf   :  { %s19_s26 = sshll.u32 %s440_s25, 4  ;;  %s42_s28 = sshll.u32 %s441_s27, 4  ;;  %s20_s26 = int_to_ptr.vmem [resolvable:$true] %s19_s26  ;;  %s43_s28 = int_to_ptr.vmem [resolvable:$true] %s42_s28 }
  0x10   :  { %s379_s29 = scalar_lea.vmem %s20_s26, 128  ;;  %p384_p6 = scmp.lt.s32.totalorder %s20_s26, %s20_s26 }
  0x11   :  { %p380_p5 = scmp.ne.s32.totalorder %s20_s26, %s379_s29  ;;  %p385_p7 = scmp.lt.s32.totalorder %s379_s29, %s379_s29 }
  0x13   :  { %p386_p8 = por %p385_p7, %p384_p6 }
  0x15   :  { %p387_p9 = pnand %p386_p8, %p380_p5 }
  0x17   :  { %390 = shalt.err (!%p387_p9)
}
  0x18   :  { %22 = dma.hbm_to_vmem [thread:$0]  %s519_s0, 128, %s20_s26, [#allocation3]  }
  0x19   :  { %s399_s7 = scalar_lea.vmem %s43_s28, 2048  ;;  %p404_p11 = scmp.lt.s32.totalorder %s43_s28, %s43_s28 }
  0x1a   :  { %p400_p10 = scmp.ne.s32.totalorder %s43_s28, %s399_s7  ;;  %p405_p12 = scmp.lt.s32.totalorder %s399_s7, %s399_s7 }
  0x1c   :  { %p406_p13 = por %p405_p12, %p404_p11 }
  0x1e   :  { %p407_p0 = pnand %p406_p13, %p400_p10 }
  0x20   :  { %410 = shalt.err (!%p407_p0)
}
  0x21   :  { %48 = dma.hbm_to_vmem [thread:$0]  %s522_s3, 2048, %s43_s28, [#allocation6], %s438_s21, %s438_s21, %s439_s22  }
  0x22   :  { %431 = dma.done.wait [#allocation3], 128  }
  0x23   :  { %432 = vsyncadd [#allocation3], 4294967168 }
  0x24   :  { %433 = dma.done.wait [#allocation6], 3072  }
  0x25   :  { %434 = vsyncadd [#allocation6], 4294964224  ;;  %v442_v0 = vmov 0.0   ;;  %vm443_vm0 = vmmov 0   ;;  %v68_v1 = vld [vmem:[#allocation5 + $0x38] sm:$0xff]  ;;  %v67_v2 = vld [vmem:[#allocation5 + $0x30] sm:$0xff] }
  0x26   :  { %289 = vmatprep.subr.mxu0 %v442_v0  ;;  %305 = vmatprep.mubr.msk.f32.mxu0 %vm443_vm0, %v442_v0  ;;  %v66_v3 = vld [vmem:[#allocation5 + $0x28] sm:$0xff]  ;;  %v165_v4 = vld [vmem:[#allocation7 + $0x78] sm:$0xff]  ;;  %v164_v5 = vld [vmem:[#allocation7 + $0x70] sm:$0xff]  ;;  %vm76_vm1 = vcmask 523264   ;;  %s444_s11 = smov [#allocation8]  }
  0x27   :  { %308 = vmatprep.subr.mxu1 %v442_v0  ;;  %340 = vmatprep.mubr.msk.f32.mxu1 %vm443_vm0, %v442_v0  ;;  %v65_v6 = vld [vmem:[#allocation5 + $0x20] sm:$0xff]  ;;  %v163_v7 = vld [vmem:[#allocation7 + $0x68] sm:$0xff]  ;;  %v64_v8 = vld [vmem:[#allocation5 + $0x18] sm:$0xff]  ;;  %s250_s12 = sshll.u32 %s444_s11, 4  ;;  %s251_s12 = int_to_ptr.vmem [resolvable:$true] %s250_s12 }
  0x28   :  { %290 = vmatpush3.msra.mxu0 %v68_v1  ;;  %309 = vmatpush3.msra.mxu1 %v165_v4  ;;  %v162_v9 = vld [vmem:[#allocation7 + $0x60] sm:$0xff]  ;;  %v63_v10 = vld [vmem:[#allocation5 + $0x10] sm:$0xff]  ;;  %v161_v11 = vld [vmem:[#allocation7 + $0x58] sm:$0xff]  ;;  %s411_s13 = scalar_lea.vmem %s251_s12, 128  ;;  %p416_p2 = scmp.lt.s32.totalorder %s251_s12, %s251_s12 }
  0x29   :  { %291 = vmatprep.subr.mxu0 %v442_v0  ;;  %310 = vmatprep.subr.mxu1 %v442_v0  ;;  %v62_v12 = vld [vmem:[#allocation5 + $0x8] sm:$0xff]  ;;  %v160_v13 = vld [vmem:[#allocation7 + $0x50] sm:$0xff]  ;;  %v61_v14 = vld [vmem:[#allocation5] sm:$0xff]  ;;  %p412_p1 = scmp.ne.s32.totalorder %s251_s12, %s411_s13  ;;  %p417_p3 = scmp.lt.s32.totalorder %s411_s13, %s411_s13 }
  0x2a   :  { %292 = vmatpush3.msra.mxu0 %v67_v2  ;;  %311 = vmatpush3.msra.mxu1 %v164_v5  ;;  %v60_v15 = vld [vmem:[#allocation2] sm:$0xff]  ;;  %v159_v16 = vld [vmem:[#allocation7 + $0x48] sm:$0xff]  ;;  %v158_v17 = vld [vmem:[#allocation7 + $0x40] sm:$0xff] }
  0x2b   :  { %293 = vmatprep.subr.mxu0 %v442_v0  ;;  %312 = vmatprep.subr.mxu1 %v442_v0  ;;  %v157_v18 = vld [vmem:[#allocation7 + $0x38] sm:$0xff]  ;;  %v156_v19 = vld [vmem:[#allocation7 + $0x30] sm:$0xff]  ;;  %v155_v20 = vld [vmem:[#allocation7 + $0x28] sm:$0xff]  ;;  %p418_p4 = por %p417_p3, %p416_p2 }
  0x2c   :  { %294 = vmatpush3.msra.mxu0 %v66_v3  ;;  %313 = vmatpush3.msra.mxu1 %v163_v7  ;;  %v154_v21 = vld [vmem:[#allocation7 + $0x20] sm:$0xff]  ;;  %v153_v22 = vld [vmem:[#allocation7 + $0x18] sm:$0xff]  ;;  %v152_v23 = vld [vmem:[#allocation7 + $0x10] sm:$0xff] }
  0x2d   :  { %295 = vmatprep.subr.mxu0 %v442_v0  ;;  %314 = vmatprep.subr.mxu1 %v442_v0  ;;  %v151_v24 = vld [vmem:[#allocation7 + $0x8] sm:$0xff]  ;;  %v150_v25 = vld [vmem:[#allocation7] sm:$0xff]  ;;  %v260_v26 = vld [vmem:[%s521_s2] ss:$0 sm:$0xff]  ;;  %p419_p5 = pnand %p418_p4, %p412_p1 }
  0x2e   :  { %296 = vmatpush3.msra.mxu0 %v65_v6  ;;  %315 = vmatpush3.msra.mxu1 %v162_v9  ;;  %v262_v30 = vld [vmem:[%s523_s4] ss:$0 sm:$0xff] }
  0x2f   :  { %297 = vmatprep.subr.mxu0 %v442_v0  ;;  %316 = vmatprep.subr.mxu1 %v442_v0 }
  0x30   :  { %298 = vmatpush3.msra.mxu0 %v64_v8  ;;  %317 = vmatpush3.msra.mxu1 %v161_v11 }
  0x31   :  { %299 = vmatprep.subr.mxu0 %v442_v0  ;;  %318 = vmatprep.subr.mxu1 %v442_v0 }
  0x32   :  { %300 = vmatpush3.msra.mxu0 %v63_v10  ;;  %319 = vmatpush3.msra.mxu1 %v160_v13 }
  0x33   :  { %301 = vmatprep.subr.mxu0 %v442_v0  ;;  %320 = vmatprep.subr.mxu1 %v442_v0 }
  0x34   :  { %302 = vmatpush3.msra.mxu0 %v62_v12  ;;  %321 = vmatpush3.msra.mxu1 %v159_v16 }
  0x35   :  { %303 = vmatprep.subr.mxu0 %v442_v0  ;;  %322 = vmatprep.subr.mxu1 %v442_v0 }
  0x36   :  { %304 = vmatpush3.msra.mxu0 %v61_v14  ;;  %323 = vmatpush3.msra.mxu1 %v158_v17 }
  0x37   :  { %306 = vmatmul.mubr.msk.f32.vlgmr.msra.gmra.mxu0 %vm76_vm1, %v60_v15  ;;  %324 = vmatprep.subr.mxu1 %v442_v0 }
  0x38   :  { %325 = vmatpush3.msra.mxu1 %v157_v18 }
  0x39   :  { %326 = vmatprep.subr.mxu1 %v442_v0 }
  0x3a   :  { %327 = vmatpush3.msra.mxu1 %v156_v19 }
  0x3b   :  { %328 = vmatprep.subr.mxu1 %v442_v0 }
  0x3c   :  { %329 = vmatpush3.msra.mxu1 %v155_v20 }
  0x3d   :  { %330 = vmatprep.subr.mxu1 %v442_v0 }
  0x3e   :  { %331 = vmatpush3.msra.mxu1 %v154_v21 }
  0x3f   :  { %332 = vmatprep.subr.mxu1 %v442_v0 }
  0x40   :  { %333 = vmatpush3.msra.mxu1 %v153_v22 }
  0x41   :  { %334 = vmatprep.subr.mxu1 %v442_v0 }
  0x42   :  { %335 = vmatpush3.msra.mxu1 %v152_v23 }
  0x43   :  { %336 = vmatprep.subr.mxu1 %v442_v0 }
  0x44   :  { %337 = vmatpush3.msra.mxu1 %v151_v24 }
  0x45   :  { %338 = vmatprep.subr.mxu1 %v442_v0 }
  0x46   :  { %339 = vmatpush3.msra.mxu1 %v150_v25 }
  0xf7   :  { %v146_v27 = vpop.f32.mrf.mxu0 }
  0xf8   :  { %v147_v28 = vadd.f32 %v260_v26, %v146_v27 }
  0xf9   :  { %v307_v29 = vpop.f32.mrf.mxu0 }
  0xfa   :  { %341 = vmatmul.mubr.f32.vlgmr.msra.gmra.mxu1 %v147_v28 }
 0x1ba   :  { %v239_v31 = vpop.f32.mrf.mxu1 }
 0x1bb   :  { %v240_v32 = vadd.f32 %v262_v30, %v239_v31 }
 0x1bc   :  { %v342_v33 = vpop.f32.mrf.mxu1 }
 0x1bd   :  { %243 = vst [vmem:[#allocation8] sm:$0xff] %v240_v32 }
 0x1be   :  { %422 = shalt.err (!%p419_p5)
}
 0x1bf   :  { %253 = dma.vmem_to_hbm [thread:$0]  %s251_s12, 128, %s524_s5, [#allocation4]  }
 0x1c0   :  { %435 = dma.done.wait [#allocation4], 128  }
 0x1c1   :  { %436 = vsyncadd [#allocation4], 4294967168 }
 0x1c2   :  { %257 = vsyncpa [#allocation3], 1 }
 0x1c3   :  { %258 = vsyncpa [#allocation6], 1 }
 0x1c4   :  { %259 = vsyncpa [#allocation4], 1 }

</bundles_post_ra>
